<compile_context>
chip_gen: v6e
topology: v6e:2x2x1
jax: 0.10.0
libtpu: 0.0.40
codegen_flags: <defaults>
</compile_context>

<pallas_src>
import functools

import jax
import jax.numpy as jnp
from jax.experimental import pallas as pl
from jax.experimental.pallas import tpu as pltpu


# ----------------------------------------------------------------------------------
# Pallas kernel 1: fused GEMM  ->  y = relu( (x @ w) * scale + shift )
#   x: (Mp, Kp) bf16, w: (Kp, Np) bf16, scale/shift: (1, Np) f32
#   f32 accumulation in VMEM scratch; K is the innermost ("arbitrary") grid axis.
# ----------------------------------------------------------------------------------
def _mm_epilogue_kernel(x_ref, w_ref, s_ref, t_ref, o_ref, acc_ref, *, relu):
    @pl.when(pl.program_id(2) == 0)
    def _():
        acc_ref[...] = jnp.zeros_like(acc_ref)

    acc_ref[...] += jnp.dot(x_ref[...], w_ref[...],
                            preferred_element_type=jnp.float32)

    @pl.when(pl.program_id(2) == pl.num_programs(2) - 1)
    def _():
        y = acc_ref[...] * s_ref[...] + t_ref[...]
        if relu:
            y = jnp.maximum(y, 0.0)
        o_ref[...] = y.astype(o_ref.dtype)


def _round_up(a, m):
    return (a + m - 1) // m * m


@functools.partial(jax.jit, static_argnames=('bm', 'bk', 'bn', 'relu', 'out_dtype'))
def _matmul_padded(xp, wp, sp, tp, *, bm, bk, bn, relu, out_dtype):
    Mp, Kp = xp.shape
    Np = wp.shape[1]
    grid = (Mp // bm, Np // bn, Kp // bk)
    return pl.pallas_call(
        functools.partial(_mm_epilogue_kernel, relu=relu),
        out_shape=jax.ShapeDtypeStruct((Mp, Np), out_dtype),
        grid=grid,
        in_specs=[
            pl.BlockSpec((bm, bk), lambda i, j, k: (i, k)),
            pl.BlockSpec((bk, bn), lambda i, j, k: (k, j)),
            pl.BlockSpec((1, bn), lambda i, j, k: (0, j)),
            pl.BlockSpec((1, bn), lambda i, j, k: (0, j)),
        ],
        out_specs=pl.BlockSpec((bm, bn), lambda i, j, k: (i, j)),
        scratch_shapes=[pltpu.VMEM((bm, bn), jnp.float32)],
        compiler_params=pltpu.CompilerParams(
            dimension_semantics=("parallel", "parallel", "arbitrary")),
    )(xp, wp, sp, tp)


def fused_matmul(x, w, scale=None, shift=None, relu=True, out_dtype=jnp.bfloat16):
    """y[:M,:N] = relu((x @ w) * scale + shift) with zero-padded, lane-dense tiling."""
    M, K = x.shape
    N = w.shape[1]
    if scale is None:
        scale = jnp.ones((1, N), jnp.float32)
    if shift is None:
        shift = jnp.zeros((1, N), jnp.float32)
    bm = _round_up(M, 8) if M <= 1024 else 512
    bk = _round_up(K, 128) if K <= 1024 else 512
    bn = _round_up(N, 128) if N <= 256 else 256
    Mp, Kp, Np = _round_up(M, bm), _round_up(K, bk), _round_up(N, bn)
    xp = jnp.pad(x.astype(jnp.bfloat16), ((0, Mp - M), (0, Kp - K)))
    wp = jnp.pad(w.astype(jnp.bfloat16), ((0, Kp - K), (0, Np - N)))
    sp = jnp.pad(scale.reshape(1, N).astype(jnp.float32), ((0, 0), (0, Np - N)))
    tp = jnp.pad(shift.reshape(1, N).astype(jnp.float32), ((0, 0), (0, Np - N)))
    out = _matmul_padded(xp, wp, sp, tp, bm=bm, bk=bk, bn=bn,
                         relu=relu, out_dtype=out_dtype)
    return out[:M, :N]


# ----------------------------------------------------------------------------------
# Pallas kernel 2: fused global avg-pool (8x8) + Linear(2048 -> nef) for cnn_code.
# ----------------------------------------------------------------------------------
def _gap_linear_kernel(x_ref, w_ref, b_ref, o_ref):
    pooled = jnp.mean(x_ref[...].astype(jnp.float32), axis=1)        # (B, C)
    o_ref[...] = jnp.dot(pooled.astype(jnp.bfloat16),
                         w_ref[...].astype(jnp.bfloat16),
                         preferred_element_type=jnp.float32) + b_ref[...]


def gap_linear(x_nhwc, w, b):
    Bn, H, W, C = x_nhwc.shape
    x3 = x_nhwc.reshape(Bn, H * W, C)
    return pl.pallas_call(
        _gap_linear_kernel,
        out_shape=jax.ShapeDtypeStruct((Bn, w.shape[1]), jnp.float32),
    )(x3, w, b.reshape(1, -1))


# ----------------------------------------------------------------------------------
# Plain-JAX glue: im2col patch stacking, pooling, padding (pure data movement).
# ----------------------------------------------------------------------------------
def im2col(x, kh, kw, stride=1, pad=(0, 0)):
    Bn, H, W, C = x.shape
    if pad != (0, 0):
        x = jnp.pad(x, ((0, 0), (pad[0], pad[0]), (pad[1], pad[1]), (0, 0)))
    Hp, Wp = x.shape[1], x.shape[2]
    OH = (Hp - kh) // stride + 1
    OW = (Wp - kw) // stride + 1
    cols = []
    for dy in range(kh):
        for dx in range(kw):
            cols.append(x[:, dy:dy + stride * (OH - 1) + 1:stride,
                          dx:dx + stride * (OW - 1) + 1:stride, :])
    patches = cols[0] if len(cols) == 1 else jnp.concatenate(cols, axis=-1)
    return patches.reshape(Bn * OH * OW, kh * kw * C), OH, OW


def max_pool_3x3_s2(x):
    Bn, H, W, C = x.shape
    OH, OW = (H - 3) // 2 + 1, (W - 3) // 2 + 1
    out = None
    for dy in range(3):
        for dx in range(3):
            v = x[:, dy:dy + 2 * OH - 1:2, dx:dx + 2 * OW - 1:2, :]
            out = v if out is None else jnp.maximum(out, v)
    return out


def avg_pool_3x3_s1_p1(x):
    Bn, H, W, C = x.shape
    xp = jnp.pad(x, ((0, 0), (1, 1), (1, 1), (0, 0)))
    acc = jnp.zeros((Bn, H, W, C), jnp.float32)
    for dy in range(3):
        for dx in range(3):
            acc = acc + xp[:, dy:dy + H, dx:dx + W, :].astype(jnp.float32)
    return (acc / 9.0).astype(x.dtype)       # count_include_pad=True like F.avg_pool2d


def basic_conv(x, p, stride=1, pad=(0, 0)):
    """BasicConv2d = Conv2d(bias=False) + BatchNorm2d(eps=1e-3) + ReLU, as one fused GEMM."""
    kh, kw = p['ksize']
    Bn = x.shape[0]
    patches, OH, OW = im2col(x, kh, kw, stride=stride, pad=pad)
    y = fused_matmul(patches, p['w'], p['scale'], p['shift'], relu=True)
    return y.reshape(Bn, OH, OW, -1)


# ----------------------------------------------------------------------------------
# Inception-v3 blocks (NHWC).
# ----------------------------------------------------------------------------------
def inception_a(x, p):
    b1 = basic_conv(x, p['b1x1'])
    b5 = basic_conv(x, p['b5_1'])
    b5 = basic_conv(b5, p['b5_2'], pad=(2, 2))
    bd = basic_conv(x, p['b3_1'])
    bd = basic_conv(bd, p['b3_2'], pad=(1, 1))
    bd = basic_conv(bd, p['b3_3'], pad=(1, 1))
    bp = basic_conv(avg_pool_3x3_s1_p1(x), p['bpool'])
    return jnp.concatenate([b1, b5, bd, bp], axis=-1)


def inception_b(x, p):
    b3 = basic_conv(x, p['b3'], stride=2)
    bd = basic_conv(x, p['b3dbl_1'])
    bd = basic_conv(bd, p['b3dbl_2'], pad=(1, 1))
    bd = basic_conv(bd, p['b3dbl_3'], stride=2)
    bp = max_pool_3x3_s2(x)
    return jnp.concatenate([b3, bd, bp], axis=-1)


def inception_c(x, p):
    b1 = basic_conv(x, p['b1x1'])
    b7 = basic_conv(x, p['b7_1'])
    b7 = basic_conv(b7, p['b7_2'], pad=(0, 3))
    b7 = basic_conv(b7, p['b7_3'], pad=(3, 0))
    bd = basic_conv(x, p['b7dbl_1'])
    bd = basic_conv(bd, p['b7dbl_2'], pad=(3, 0))
    bd = basic_conv(bd, p['b7dbl_3'], pad=(0, 3))
    bd = basic_conv(bd, p['b7dbl_4'], pad=(3, 0))
    bd = basic_conv(bd, p['b7dbl_5'], pad=(0, 3))
    bp = basic_conv(avg_pool_3x3_s1_p1(x), p['bpool'])
    return jnp.concatenate([b1, b7, bd, bp], axis=-1)


def inception_d(x, p):
    b3 = basic_conv(x, p['b3_1'])
    b3 = basic_conv(b3, p['b3_2'], stride=2)
    b7 = basic_conv(x, p['b7x3_1'])
    b7 = basic_conv(b7, p['b7x3_2'], pad=(0, 3))
    b7 = basic_conv(b7, p['b7x3_3'], pad=(3, 0))
    b7 = basic_conv(b7, p['b7x3_4'], stride=2)
    bp = max_pool_3x3_s2(x)
    return jnp.concatenate([b3, b7, bp], axis=-1)


def inception_e(x, p):
    b1 = basic_conv(x, p['b1x1'])
    b3 = basic_conv(x, p['b3_1'])
    b3 = jnp.concatenate([basic_conv(b3, p['b3_2a'], pad=(0, 1)),
                          basic_conv(b3, p['b3_2b'], pad=(1, 0))], axis=-1)
    bd = basic_conv(x, p['b3dbl_1'])
    bd = basic_conv(bd, p['b3dbl_2'], pad=(1, 1))
    bd = jnp.concatenate([basic_conv(bd, p['b3dbl_3a'], pad=(0, 1)),
                          basic_conv(bd, p['b3dbl_3b'], pad=(1, 0))], axis=-1)
    bp = basic_conv(avg_pool_3x3_s1_p1(x), p['bpool'])
    return jnp.concatenate([b1, b3, bd, bp], axis=-1)


# ----------------------------------------------------------------------------------
# CNN_ENCODER forward.
# ----------------------------------------------------------------------------------
def forward(params, x_nchw, nef):
    x = jnp.transpose(x_nchw, (0, 2, 3, 1)).astype(jnp.float32)
    Bn = x.shape[0]
    # nn.Upsample(size=(299,299), mode='bilinear')
    x = jax.image.resize(x, (Bn, 299, 299, x.shape[-1]), method='bilinear')

    x = basic_conv(x, params['Conv2d_1a_3x3'], stride=2)          # 149x149x32
    x = basic_conv(x, params['Conv2d_2a_3x3'])                    # 147x147x32
    x = basic_conv(x, params['Conv2d_2b_3x3'], pad=(1, 1))        # 147x147x64
    x = max_pool_3x3_s2(x)                                        # 73x73x64
    x = basic_conv(x, params['Conv2d_3b_1x1'])                    # 73x73x80
    x = basic_conv(x, params['Conv2d_4a_3x3'])                    # 71x71x192
    x = max_pool_3x3_s2(x)                                        # 35x35x192

    x = inception_a(x, params['Mixed_5b'])                        # 35x35x256
    x = inception_a(x, params['Mixed_5c'])                        # 35x35x288
    x = inception_a(x, params['Mixed_5d'])                        # 35x35x288
    x = inception_b(x, params['Mixed_6a'])                        # 17x17x768
    x = inception_c(x, params['Mixed_6b'])
    x = inception_c(x, params['Mixed_6c'])
    x = inception_c(x, params['Mixed_6d'])
    x = inception_c(x, params['Mixed_6e'])                        # 17x17x768
    features = x
    x = inception_d(x, params['Mixed_7a'])                        # 8x8x1280
    x = inception_e(x, params['Mixed_7b'])                        # 8x8x2048
    x = inception_e(x, params['Mixed_7c'])                        # 8x8x2048

    # F.avg_pool2d(kernel=8) + view + emb_cnn_code  (fused Pallas kernel)
    cnn_code = gap_linear(x, params['emb_cnn_code_w'], params['emb_cnn_code_b'])

    # emb_features = conv1x1(768, nef), bias=False, no BN/ReLU
    Bf, Hf, Wf, Cf = features.shape
    feat = fused_matmul(features.reshape(Bf * Hf * Wf, Cf), params['emb_features_w'],
                        relu=False, out_dtype=jnp.float32)
    feat = feat.reshape(Bf, Hf, Wf, nef)
    return jnp.transpose(feat, (0, 3, 1, 2)), cnn_code


# ----------------------------------------------------------------------------------
# Parameter initialization (pre_train=False path: random weights).
# ----------------------------------------------------------------------------------
def init_params(key, nef):
    counter = [0]

    def nk():
        counter[0] += 1
        return jax.random.fold_in(key, counter[0])

    bn_scale = (1.0 + 1e-3) ** -0.5   # BatchNorm folded with default running stats

    def conv_p(cin, cout, kh, kw):
        fan_in = cin * kh * kw
        w = jax.random.normal(nk(), (kh * kw * cin, cout), jnp.float32) * (2.0 / fan_in) ** 0.5
        return {'w': w,
                'scale': jnp.full((1, cout), bn_scale, jnp.float32),
                'shift': jnp.zeros((1, cout), jnp.float32),
                'ksize': (kh, kw)}

    P = {'Conv2d_1a_3x3': conv_p(3, 32, 3, 3),
         'Conv2d_2a_3x3': conv_p(32, 32, 3, 3),
         'Conv2d_2b_3x3': conv_p(32, 64, 3, 3),
         'Conv2d_3b_1x1': conv_p(64, 80, 1, 1),
         'Conv2d_4a_3x3': conv_p(80, 192, 3, 3)}

    def inception_a_p(cin, pool_features):
        return {'b1x1': conv_p(cin, 64, 1, 1),
                'b5_1': conv_p(cin, 48, 1, 1), 'b5_2': conv_p(48, 64, 5, 5),
                'b3_1': conv_p(cin, 64, 1, 1), 'b3_2': conv_p(64, 96, 3, 3),
                'b3_3': conv_p(96, 96, 3, 3),
                'bpool': conv_p(cin, pool_features, 1, 1)}

    def inception_b_p(cin):
        return {'b3': conv_p(cin, 384, 3, 3),
                'b3dbl_1': conv_p(cin, 64, 1, 1), 'b3dbl_2': conv_p(64, 96, 3, 3),
                'b3dbl_3': conv_p(96, 96, 3, 3)}

    def inception_c_p(cin, c7):
        return {'b1x1': conv_p(cin, 192, 1, 1),
                'b7_1': conv_p(cin, c7, 1, 1), 'b7_2': conv_p(c7, c7, 1, 7),
                'b7_3': conv_p(c7, 192, 7, 1),
                'b7dbl_1': conv_p(cin, c7, 1, 1), 'b7dbl_2': conv_p(c7, c7, 7, 1),
                'b7dbl_3': conv_p(c7, c7, 1, 7), 'b7dbl_4': conv_p(c7, c7, 7, 1),
                'b7dbl_5': conv_p(c7, 192, 1, 7),
                'bpool': conv_p(cin, 192, 1, 1)}

    def inception_d_p(cin):
        return {'b3_1': conv_p(cin, 192, 1, 1), 'b3_2': conv_p(192, 320, 3, 3),
                'b7x3_1': conv_p(cin, 192, 1, 1), 'b7x3_2': conv_p(192, 192, 1, 7),
                'b7x3_3': conv_p(192, 192, 7, 1), 'b7x3_4': conv_p(192, 192, 3, 3)}

    def inception_e_p(cin):
        return {'b1x1': conv_p(cin, 320, 1, 1),
                'b3_1': conv_p(cin, 384, 1, 1), 'b3_2a': conv_p(384, 384, 1, 3),
                'b3_2b': conv_p(384, 384, 3, 1),
                'b3dbl_1': conv_p(cin, 448, 1, 1), 'b3dbl_2': conv_p(448, 384, 3, 3),
                'b3dbl_3a': conv_p(384, 384, 1, 3), 'b3dbl_3b': conv_p(384, 384, 3, 1),
                'bpool': conv_p(cin, 192, 1, 1)}

    P['Mixed_5b'] = inception_a_p(192, 32)
    P['Mixed_5c'] = inception_a_p(256, 64)
    P['Mixed_5d'] = inception_a_p(288, 64)
    P['Mixed_6a'] = inception_b_p(288)
    P['Mixed_6b'] = inception_c_p(768, 128)
    P['Mixed_6c'] = inception_c_p(768, 160)
    P['Mixed_6d'] = inception_c_p(768, 160)
    P['Mixed_6e'] = inception_c_p(768, 192)
    P['Mixed_7a'] = inception_d_p(768)
    P['Mixed_7b'] = inception_e_p(1280)
    P['Mixed_7c'] = inception_e_p(2048)

    # init_trainable_weights(): uniform(-0.1, 0.1) on emb layers
    P['emb_features_w'] = jax.random.uniform(nk(), (768, nef), jnp.float32, -0.1, 0.1)
    P['emb_cnn_code_w'] = jax.random.uniform(nk(), (2048, nef), jnp.float32, -0.1, 0.1)
    P['emb_cnn_code_b'] = jax.random.uniform(nk(), (nef,), jnp.float32,
                                             -1.0 / 2048 ** 0.5, 1.0 / 2048 ** 0.5)
    return P


# ===================================== main =======================================
if __name__ == "__main__":
    NEF = 128           # nef (text/image joint embedding dim), kept small
    BATCH = 2
    key = jax.random.PRNGKey(0)
    kp, kx = jax.random.split(key)
    params = init_params(kp, NEF)

    x = jax.random.normal(kx, (BATCH, 3, 64, 64), jnp.float32)   # small input image

    features, cnn_code = forward(params, x, NEF)
    jax.block_until_ready((features, cnn_code))
    assert features.shape == (BATCH, NEF, 17, 17)
    assert cnn_code.shape == (BATCH, NEF)
    print("KERNEL_OK")
</pallas_src>

<mosaic_0001>
module attributes {stable_mosaic.version = 11 : i64} {
  func.func @_mm_epilogue_kernel(%arg0: i32, %arg1: i32, %arg2: i32, %arg3: memref<512x128xbf16, #tpu.memory_space<vmem>>, %arg4: memref<128x128xbf16, #tpu.memory_space<vmem>>, %arg5: memref<1x128xf32, #tpu.memory_space<vmem>>, %arg6: memref<1x128xf32, #tpu.memory_space<vmem>>, %arg7: memref<512x128xbf16, #tpu.memory_space<vmem>>, %arg8: memref<512x128xf32, #tpu.memory_space<vmem>>) attributes {dimension_semantics = [#tpu.dimension_semantics<parallel>, #tpu.dimension_semantics<parallel>, #tpu.dimension_semantics<arbitrary>], iteration_bounds = array<i64: 87, 1, 1>, scalar_prefetch = 0 : i64, scratch_operands = 1 : i64, tpu.core_type = #tpu.core_type<tc>, window_params = [{transform_indices = @transform_0, window_bounds = array<i64: 512, 128>}, {transform_indices = @transform_1, window_bounds = array<i64: 128, 128>}, {transform_indices = @transform_2, window_bounds = array<i64: 1, 128>}, {transform_indices = @transform_3, window_bounds = array<i64: 1, 128>}, {transform_indices = @transform_4, window_bounds = array<i64: 512, 128>}]} {
    %c0_i32 = arith.constant 0 : i32
    %0 = arith.cmpi eq, %arg2, %c0_i32 : i32
    %1 = arith.extui %0 : i1 to i32
    %c0_i32_0 = arith.constant 0 : i32
    %2 = arith.cmpi ne, %1, %c0_i32_0 : i32
    scf.if %2 {
      %cst_10 = arith.constant 0.000000e+00 : f32
      %12 = vector.broadcast %cst_10 : f32 to vector<512x128xf32>
      %c0_11 = arith.constant 0 : index
      %c0_12 = arith.constant 0 : index
      %13 = vector.load %arg8[%c0_11, %c0_12] : memref<512x128xf32, #tpu.memory_space<vmem>>, vector<512x128xf32>
      tpu.vector_store %arg8[%c0_11, %c0_12], %12 {strides = array<i32>} : memref<512x128xf32, #tpu.memory_space<vmem>>, vector<512x128xf32>,
    } else {
    }
    %c0 = arith.constant 0 : index
    %c0_1 = arith.constant 0 : index
    %3 = vector.load %arg8[%c0, %c0_1] : memref<512x128xf32, #tpu.memory_space<vmem>>, vector<512x128xf32>
    %c0_2 = arith.constant 0 : index
    %c0_3 = arith.constant 0 : index
    %4 = vector.load %arg3[%c0_2, %c0_3] : memref<512x128xbf16, #tpu.memory_space<vmem>>, vector<512x128xbf16>
    %c0_4 = arith.constant 0 : index
    %c0_5 = arith.constant 0 : index
    %5 = vector.load %arg4[%c0_4, %c0_5] : memref<128x128xbf16, #tpu.memory_space<vmem>>, vector<128x128xbf16>
    %cst = arith.constant dense<0.000000e+00> : vector<512x128xf32>
    %6 = tpu.matmul %4, %5, %cst {dimension_numbers = #tpu.dot_dimension_numbers<[1], [0], [0], [1], [0, 0, 1, 1], [], []>} : vector<512x128xbf16>, vector<128x128xbf16>, vector<512x128xf32> -> vector<512x128xf32>
    %7 = arith.addf %3, %6 : vector<512x128xf32>
    %c0_6 = arith.constant 0 : index
    %c0_7 = arith.constant 0 : index
    %8 = vector.load %arg8[%c0_6, %c0_7] : memref<512x128xf32, #tpu.memory_space<vmem>>, vector<512x128xf32>
    tpu.vector_store %arg8[%c0_6, %c0_7], %7 {strides = array<i32>} : memref<512x128xf32, #tpu.memory_space<vmem>>, vector<512x128xf32>,
    %c0_i32_8 = arith.constant 0 : i32
    %9 = arith.cmpi eq, %arg2, %c0_i32_8 : i32
    %10 = arith.extui %9 : i1 to i32
    %c0_i32_9 = arith.constant 0 : i32
    %11 = arith.cmpi ne, %10, %c0_i32_9 : i32
    scf.if %11 {
      %c0_10 = arith.constant 0 : index
      %c0_11 = arith.constant 0 : index
      %12 = vector.load %arg8[%c0_10, %c0_11] : memref<512x128xf32, #tpu.memory_space<vmem>>, vector<512x128xf32>
      %c0_12 = arith.constant 0 : index
      %c0_13 = arith.constant 0 : index
      %13 = vector.load %arg5[%c0_12, %c0_13] : memref<1x128xf32, #tpu.memory_space<vmem>>, vector<1x128xf32>
      %14 = vector.broadcast %13 : vector<1x128xf32> to vector<512x128xf32>
      %15 = arith.mulf %12, %14 : vector<512x128xf32>
      %c0_14 = arith.constant 0 : index
      %c0_15 = arith.constant 0 : index
      %16 = vector.load %arg6[%c0_14, %c0_15] : memref<1x128xf32, #tpu.memory_space<vmem>>, vector<1x128xf32>
      %17 = vector.broadcast %16 : vector<1x128xf32> to vector<512x128xf32>
      %18 = arith.addf %15, %17 : vector<512x128xf32>
      %cst_16 = arith.constant 0.000000e+00 : f32
      %19 = vector.broadcast %cst_16 : f32 to vector<512x128xf32>
      %20 = arith.maximumf %18, %19 : vector<512x128xf32>
      %21 = arith.truncf %20 : vector<512x128xf32> to vector<512x128xbf16>
      %c0_17 = arith.constant 0 : index
      %c0_18 = arith.constant 0 : index
      %22 = vector.load %arg7[%c0_17, %c0_18] : memref<512x128xbf16, #tpu.memory_space<vmem>>, vector<512x128xbf16>
      tpu.vector_store %arg7[%c0_17, %c0_18], %21 {strides = array<i32>} : memref<512x128xbf16, #tpu.memory_space<vmem>>, vector<512x128xbf16>,
    } else {
    }
    return
  }
  func.func @transform_0(%arg0: i32, %arg1: i32, %arg2: i32) -> (i32, i32) {
    %c0_i32 = arith.constant 0 : i32
    return %arg0, %arg2 : i32, i32
  }
  func.func @transform_1(%arg0: i32, %arg1: i32, %arg2: i32) -> (i32, i32) {
    %c0_i32 = arith.constant 0 : i32
    return %arg2, %arg1 : i32, i32
  }
  func.func @transform_2(%arg0: i32, %arg1: i32, %arg2: i32) -> (i32, i32) {
    %c0_i32 = arith.constant 0 : i32
    %c0_i32_0 = arith.constant 0 : i32
    return %c0_i32, %arg1 : i32, i32
  }
  func.func @transform_3(%arg0: i32, %arg1: i32, %arg2: i32) -> (i32, i32) {
    %c0_i32 = arith.constant 0 : i32
    %c0_i32_0 = arith.constant 0 : i32
    return %c0_i32, %arg1 : i32, i32
  }
  func.func @transform_4(%arg0: i32, %arg1: i32, %arg2: i32) -> (i32, i32) {
    %c0_i32 = arith.constant 0 : i32
    return %arg0, %arg1 : i32, i32
  }
}

</mosaic_0001>

<bundles_post_ra>
// kernel: _matmul_padded.1
= control target key start
LH: loop header
LB: loop body
LE: loop exit
PB: predicated region body
PF: predicated region fallthrough
CT: control target
= control target key end

     0   :  { %9 = vsyncpa [#allocation4], 0  ;;  %s3207_s0 = inlined_call_operand.hbm [shape: bf16[44544,128], index: 0, kind: input, shape index: {}]   ;;  %s3208_s1 = inlined_call_operand.hbm [shape: bf16[128,128], index: 1, kind: input, shape index: {}]   ;;  %s3209_s2 = inlined_call_operand.hbm [shape: f32[1,128], index: 2, kind: input, shape index: {}]   ;;  %s3210_s3 = inlined_call_operand.hbm [shape: f32[1,128], index: 3, kind: input, shape index: {}]   ;;  %s3211_s4 = inlined_call_operand.hbm [shape: bf16[44544,128], index: 4, kind: output, shape index: {}]  }
   0x1   :  { %11 = vsyncpa [#allocation4 + $0x1], 0 }
   0x2   :  { %12 = vsyncpa [#allocation7], 0 }
   0x3   :  { %13 = vsyncpa [#allocation10], 0 }
   0x4   :  { %14 = vsyncpa [#allocation5], 0 }
   0x5   :  { %16 = vsyncpa [#allocation5 + $0x1], 0  ;;  %s2798_s15 = smov 0   ;;  %s2800_s16 = smov 0  }
   0x6   :  { %s2802_s17 = smov 0   ;;  %s2804_s18 = smov 0  }
   0x7   :  { %s2806_s19 = smov 0   ;;  %s2808_s20 = smov 0  }
   0x8 LB: > { %s1911_s21 = sadd.s32 4294967295, %s2762_s20   ;;  %s1912_s22 = sadd.s32 4294967294, %s2762_s20   ;;  %s2762_s20 = sphi %s2808_s20, %s22_s20   ;;  %s2758_s19 = sphi %s2806_s19, %s3234_s19   ;;  %s2754_s18 = sphi %s2804_s18, %s3233_s18   ;;  %s2750_s17 = sphi %s2802_s17, %s3232_s17   ;;  %s2746_s16 = sphi %s2800_s16, %s3231_s16   ;;  %s2742_s15 = sphi %s2798_s15, %s3230_s15  }
   0x9   : > { %p63_p0 = scmp.ne.s32.totalorder %s2746_s16, %s2742_s15  ;;  %p2832_p1 = scmp.eq.s32.totalorder %s1911_s21, 0 }
   0xa   : > { %p2836_p2 = scmp.eq.s32.totalorder %s1911_s21, 86  ;;  %p175_p3 = scmp.eq.s32.totalorder %s1912_s22, 86 }
   0xb   : > { %s3217_s23 = scalar_select %p2832_p1, 1, 0 }
   0xc   : > { %p2842_p4 = por %p2832_p1, %p63_p0  ;;  %p1913_p5 = scmp.ge.s32.totalorder %s2762_s20, 1 }
   0xd   : > { %p2847_p6 = por %p175_p3, %p63_p0  ;;  %p182_p7 = scmp.lt.s32.totalorder %s2762_s20, 88 }
   0xe   : > { %s3219_s25 = scalar_select %p2842_p4, 1, 0 }
   0xf   : > { %s3220_s26 = scalar_select %p2847_p6, 1, 0 }
  0x10   : > { %p2852_p8 = pnand %p1913_p5, %p182_p7  ;;  %s2764_s28 = smov [#allocation6]  }
  0x11   : > { %s198_s29 = sshll.u32 %s2764_s28, 4  ;;  %s2765_s5 = smov [#allocation8]   ;;  %s199_s29 = int_to_ptr.vmem [resolvable:$true] %s198_s29 }
  0x12   : > { %p2447_p9 = pneg %p2852_p8  ;;  %s214_s6 = sshll.u32 %s2765_s5, 4  ;;  %s215_s6 = int_to_ptr.vmem [resolvable:$true] %s214_s6 }
  0x13   : > { %s2766_s7 = smov [#allocation9]   ;;  %s2579_s9 = scalar_lea.vmem %s199_s29, 1024 }
  0x14   : > { %p2860_p10 = pnand %p2447_p9, %p2832_p1  ;;  %s227_s8 = sshll.u32 %s2766_s7, 4  ;;  %s228_s8 = int_to_ptr.vmem [resolvable:$true] %s227_s8 }
  0x15   : > { %p2580_p12 = scmp.ne.s32.totalorder %s199_s29, %s2579_s9  ;;  %p2587_p3 = scmp.lt.s32.totalorder %s199_s29, %s199_s29 }
  0x16   : > { %p2570_p11 = pneg %p2860_p10  ;;  %p2588_p5 = scmp.lt.s32.totalorder %s2579_s9, %s2579_s9 }
  0x18   : > { %p2582_p13 = pnand %p2580_p12, %p2570_p11  ;;  %p2589_p7 = por %p2588_p5, %p2587_p3 }
  0x1a   : > { %p2583_p0 = pneg %p2582_p13 }
  0x1c   : > { %p2590_p9 = pnand %p2589_p7, %p2583_p0 }
  0x1e   : > { %2593 = shalt.err (!%p2590_p9)
}
  0x1f   : > { %s3215_s10 = smov 64   ;;  %s3216_s11 = smov 4  }
  0x20   : > { %2450 = dma.hbm_to_vmem [thread:$0]  (!%p2860_p10), %s3208_s1, 1024, %s199_s29, [#allocation7], %s3215_s10, %s3215_s10, %s3216_s11  }
  0x21   : > { %s2605_s14 = scalar_lea.vmem %s215_s6, 16  ;;  %s2612_s21 = scalar_lea.vmem %s215_s6, 32 }
  0x22   : > { %p2606_p12 = scmp.ne.s32.totalorder %s215_s6, %s2605_s14  ;;  %p2613_p0 = scmp.lt.s32.totalorder %s215_s6, %s215_s6 }
  0x23   : > { %p2614_p5 = scmp.lt.s32.totalorder %s2612_s21, %s2605_s14 }
  0x24   : > { %p2608_p13 = pnand %p2606_p12, %p2570_p11 }
  0x25   : > { %p2615_p7 = por %p2614_p5, %p2613_p0 }
  0x26   : > { %p2609_p3 = pneg %p2608_p13 }
  0x28   : > { %p2616_p9 = pnand %p2615_p7, %p2609_p3 }
  0x2a   : > { %2619 = shalt.err (!%p2616_p9)
}
  0x2b   : > { %2453 = dma.hbm_to_vmem [thread:$0]  (!%p2860_p10), %s3209_s2, 16, %s215_s6, [#allocation7]  }
  0x2c   : > { %s2631_s29 = scalar_lea.vmem %s228_s8, 16  ;;  %s2638_s5 = scalar_lea.vmem %s228_s8, 32 }
  0x2d   : > { %p2632_p6 = scmp.ne.s32.totalorder %s228_s8, %s2631_s29  ;;  %p2639_p1 = scmp.lt.s32.totalorder %s228_s8, %s228_s8 }
  0x2e   : > { %p2640_p4 = scmp.lt.s32.totalorder %s2638_s5, %s2631_s29 }
  0x2f   : > { %p2634_p12 = pnand %p2632_p6, %p2570_p11 }
  0x30   : > { %p2641_p0 = por %p2640_p4, %p2639_p1 }
  0x31   : > { %p2635_p13 = pneg %p2634_p12 }
  0x33   : > { %p2642_p3 = pnand %p2641_p0, %p2635_p13 }
  0x35   : > { %2645 = shalt.err (!%p2642_p3)
}
  0x36   : > { %2456 = dma.hbm_to_vmem [thread:$0]  (!%p2860_p10), %s3210_s3, 16, %s228_s8, [#allocation10]  }
  0x37   : > { %s50_s6 = sadd.s32 1, %s2750_s17  ;;  %s41_s12 = sadd.s32 1, %s2758_s19 }
  0x38   : > { %p57_p1 = scmp.ne.s32.totalorder %s2750_s17, %s2746_s16  ;;  %p43_p4 = scmp.ge.s32.totalorder %s41_s12, 87 }
  0x39   : > { %p58_p6 = scmp.eq.s32.totalorder %s2762_s20, 0  ;;  %p2468_p5 = scmp.lt.s32.totalorder %s2762_s20, 87 }
  0x3a   : > { %p2900_p11 = por %p2836_p2, %p57_p1  ;;  %s3236_s12 = smov (%p43_p4, %s41_s12), 0 }
  0x3b   : > { %p59_p7 = por %p58_p6, %p57_p1  ;;  %s238_s13 = sand.u32 1, %s2750_s17  }
  0x3c   : > { %s45_s14 = ssub.s32 %s2758_s19, %s3236_s12  ;;  %s1918_s8 = sshll.u32 %s238_s13, 8 }
  0x3d   : > { %p48_p9 = scmp.eq.s32.totalorder %s45_s14, 0  ;;  %s2038_s21 = sshll.u32 %s2758_s19, 12 }
  0x3e   : > { %s249_s24 = scalar_lea.hbm %s3207_s0, %s2038_s21  ;;  %s242_s5 = scalar_lea.vmem [#allocation3], %s1918_s8 }
  0x3f   : > { %s2912_s22 = scalar_select %p48_p9, %s2750_s17, %s50_s6  }
  0x40   : > { %s250_s7 = sshll.u32 %s242_s5, 4  ;;  %p2919_p2 = pnand %p2468_p5, %p59_p7  ;;  %s251_s7 = int_to_ptr.vmem [resolvable:$true] %s250_s7 }
  0x41   : > { %s239_s10 = scalar_lea.sflag [#allocation4], %s238_s13  ;;  %s2659_s14 = scalar_lea.vmem %s251_s7, 4096 }
  0x42   : > { %p2648_p10 = pneg %p2919_p2  ;;  %p2660_p12 = scmp.ne.s32.totalorder %s251_s7, %s2659_s14 }
  0x43   : > { %s2769_s6 = smov [#allocation3]  }
  0x44   : > { %p2662_p13 = pnand %p2660_p12, %p2648_p10  ;;  %s2664_s11 = sshll.u32 %s2769_s6, 4  ;;  %s2665_s11 = int_to_ptr.vmem [resolvable:$false] %s2664_s11 }
  0x45   : > { %s2666_s21 = scalar_lea.vmem %s2665_s11, 8192  ;;  %p2667_p3 = scmp.lt.s32.totalorder %s251_s7, %s2665_s11 }
  0x46   : > { %p2663_p0 = pneg %p2662_p13  ;;  %p2668_p1 = scmp.lt.s32.totalorder %s2666_s21, %s2659_s14 }
  0x48   : > { %p2669_p4 = por %p2668_p1, %p2667_p3 }
  0x4a   : > { %p2670_p6 = pnand %p2669_p4, %p2663_p0 }
  0x4c   : > { %2673 = shalt.err (!%p2670_p6)
}
  0x4d   : > { %s3225_s8 = smov 4   ;;  %s3226_s28 = smov 64  }
  0x4e   : > { %2460 = dma.hbm_to_vmem [thread:$0]  (!%p2919_p2), %s249_s24, 4096, %s251_s7, %s239_s10, %s3226_s28, %s3226_s28, %s3225_s8  }
  0x4f   : > { %262 = sbr.rel (%p2852_p8) target bundleno = 400 (0x190), region = 36  ;;  %s2933_s13 = sand.u32 (!%p2852_p8), 1, %s2746_s16  }
  0x50   : > { %s1922_s11 = sshll.u32 (!%p2852_p8), %s2933_s13, 8  ;;  %s265_s29 = scalar_lea.sflag (!%p2852_p8), [#allocation4], %s2933_s13 }
  0x51   : > { %s2939_s5 = scalar_lea.vmem (!%p2852_p8), [#allocation3], %s1922_s11  ;;  %p3227_p5 = scmp.ne.s32.totalorder (!%p2852_p8), %s3219_s25, 0 }
  0x54   : > { %2725 = dma.done.wait (%p3227_p5), %s265_s29, 4096  }
  0x55   : > { %2727 = vsyncadd (%p3227_p5), %s265_s29, 4294963200  ;;  %p3228_p7 = scmp.ne.s32.totalorder %s3217_s23, 0 }
  0x57   : > { %2729 = dma.done.wait (%p3228_p7), [#allocation7], 1040  }
  0x58   : > { %2731 = vsyncadd (%p3228_p7), [#allocation7], 4294966256 }
  0x59   : > { %2733 = dma.done.wait (%p3228_p7), [#allocation10], 16  }
  0x5a   : > { %2735 = vsyncadd (%p3228_p7), [#allocation10], 4294967280  ;;  %v2528_v0 = vld [vmem:[#allocation6 + $0x38] sm:$0xff]   ;;  %v2529_v1 = vld [vmem:[#allocation6 + $0x30] sm:$0xff]   ;;  %s3011_s23 = scalar_lea.vmem [#allocation11], %s1922_s11  ;;  %s2103_s25 = sshll.u32 %s2754_s18, 12 }
  0x5b   : > { %2335 = vmatprep.subr.bf16.mxu0 %v2528_v0  ;;  %2415 = vmatprep.subr.bf16.mxu1 %v2528_v0  ;;  %v2530_v2 = vld [vmem:[#allocation6 + $0x28] sm:$0xff]   ;;  %v2531_v3 = vld [vmem:[#allocation6 + $0x20] sm:$0xff]   ;;  %v2532_v6 = vld [vmem:[#allocation6 + $0x18] sm:$0xff]   ;;  %s1786_s27 = sshll.u32 %s3011_s23, 4  ;;  %s3154_s18 = scalar_lea.hbm %s3211_s4, %s2103_s25  ;;  %s3156_s27 = int_to_ptr.vmem [resolvable:$true] %s1786_s27 }
  0x5c   : > { %2336 = vmatpush3.bf16.msra.mxu0 %v2528_v0  ;;  %2423 = vmatpush3.bf16.msra.mxu1 %v2528_v0  ;;  %v2536_v4 = vld [vmem:[%s2939_s5] sm:$0xff]   ;;  %v2533_v7 = vld [vmem:[#allocation6 + $0x10] sm:$0xff]   ;;  %v2534_v8 = vld [vmem:[#allocation6 + $0x8] sm:$0xff]   ;;  %s1772_s7 = scalar_lea.sflag [#allocation5], %s2933_s13  ;;  %s2674_s9 = scalar_lea.vmem %s3156_s27, 4096 }
  0x5d   : > { %2337 = vmatprep.subr.bf16.mxu0 %v2529_v1  ;;  %2416 = vmatprep.subr.bf16.mxu1 %v2529_v1  ;;  %v2537_v5 = vld [vmem:[%s2939_s5 + $0x80] sm:$0xff]   ;;  %v2538_v10 = vld [vmem:[%s2939_s5 + $0x8] sm:$0xff]   ;;  %v2540_v12 = vld [vmem:[%s2939_s5 + $0x10] sm:$0xff]   ;;  %p2675_p8 = scmp.ne.s32.totalorder %s3156_s27, %s2674_s9  ;;  %s2770_s14 = smov [#allocation11]  }
  0x5e   : > { %2351 = vmatprep.mubr.bf16.mxu0 %v2536_v4  ;;  %2383 = vmatprep.mubr.bf16.mxu1 %v2537_v5  ;;  %v2535_v9 = vld [vmem:[#allocation6] sm:$0xff]   ;;  %v2539_v11 = vld [vmem:[%s2939_s5 + $0x88] sm:$0xff]   ;;  %v2541_v13 = vld [vmem:[%s2939_s5 + $0x90] sm:$0xff]   ;;  %s2678_s6 = sshll.u32 %s2770_s14, 4  ;;  %s2679_s6 = int_to_ptr.vmem [resolvable:$false] %s2678_s6 }
  0x5f   : > { %v2542_v14 = vld [vmem:[%s2939_s5 + $0x18] sm:$0xff]   ;;  %v2544_v16 = vld [vmem:[%s2939_s5 + $0x20] sm:$0xff]   ;;  %v2546_v18 = vld [vmem:[%s2939_s5 + $0x28] sm:$0xff]   ;;  %p2676_p9 = pnand %p2675_p8, %p2900_p11  ;;  %s2680_s21 = scalar_lea.vmem %s2679_s6, 8192 }
  0x60   : > { %2338 = vmatpush3.bf16.msra.mxu0 %v2529_v1  ;;  %2424 = vmatpush3.bf16.msra.mxu1 %v2529_v1  ;;  %v2543_v15 = vld [vmem:[%s2939_s5 + $0x98] sm:$0xff]   ;;  %v2545_v17 = vld [vmem:[%s2939_s5 + $0xa0] sm:$0xff]   ;;  %v2547_v19 = vld [vmem:[%s2939_s5 + $0xa8] sm:$0xff]   ;;  %p2681_p10 = scmp.lt.s32.totalorder %s3156_s27, %s2679_s6  ;;  %p2682_p12 = scmp.lt.s32.totalorder %s2680_s21, %s2674_s9 }
  0x61   : > { %2339 = vmatprep.subr.bf16.mxu0 %v2530_v2  ;;  %2417 = vmatprep.subr.bf16.mxu1 %v2530_v2  ;;  %v2548_v20 = vld [vmem:[%s2939_s5 + $0x30] sm:$0xff]   ;;  %v2550_v22 = vld [vmem:[%s2939_s5 + $0x38] sm:$0xff]   ;;  %v2552_v24 = vld [vmem:[%s2939_s5 + $0x40] sm:$0xff]   ;;  %p2677_p2 = pneg %p2676_p9 }
  0x62   : > { %v2549_v21 = vld [vmem:[%s2939_s5 + $0xb0] sm:$0xff]   ;;  %v2551_v23 = vld [vmem:[%s2939_s5 + $0xb8] sm:$0xff]   ;;  %v2553_v25 = vld [vmem:[%s2939_s5 + $0xc0] sm:$0xff]   ;;  %p2683_p13 = por %p2682_p12, %p2681_p10 }
  0x63   : > { %v2554_v26 = vld [vmem:[%s2939_s5 + $0x48] sm:$0xff]   ;;  %v2556_v28 = vld [vmem:[%s2939_s5 + $0x50] sm:$0xff]   ;;  %v2558_v30 = vld [vmem:[%s2939_s5 + $0x58] sm:$0xff]  }
  0x64   : > { %2340 = vmatpush3.bf16.msra.mxu0 %v2530_v2  ;;  %2425 = vmatpush3.bf16.msra.mxu1 %v2530_v2  ;;  %v2555_v27 = vld [vmem:[%s2939_s5 + $0xc8] sm:$0xff]   ;;  %v2557_v29 = vld [vmem:[%s2939_s5 + $0xd0] sm:$0xff]   ;;  %v2559_v31 = vld [vmem:[%s2939_s5 + $0xd8] sm:$0xff]   ;;  %p2684_p0 = pnand %p2683_p13, %p2677_p2 }
  0x65   : > { %2341 = vmatprep.subr.bf16.mxu0 %v2531_v3  ;;  %2418 = vmatprep.subr.bf16.mxu1 %v2531_v3  ;;  %v2560_v32 = vld [vmem:[%s2939_s5 + $0x60] sm:$0xff]   ;;  %v2562_v34 = vld [vmem:[%s2939_s5 + $0x68] sm:$0xff]   ;;  %v2564_v36 = vld [vmem:[%s2939_s5 + $0x70] sm:$0xff]  }
  0x66   : > { %v2561_v33 = vld [vmem:[%s2939_s5 + $0xe0] sm:$0xff]   ;;  %v2563_v35 = vld [vmem:[%s2939_s5 + $0xe8] sm:$0xff]   ;;  %v2565_v37 = vld [vmem:[%s2939_s5 + $0xf0] sm:$0xff]  }
  0x67   : > { %v2566_v38 = vld [vmem:[%s2939_s5 + $0x78] sm:$0xff]   ;;  %v2985_v40 = vld [vmem:[#allocation8] ss:$0 sm:$0xff]  ;;  %v2989_v45 = vld [vmem:[#allocation9] ss:$0 sm:$0xff] }
  0x68   : > { %2342 = vmatpush3.bf16.msra.mxu0 %v2531_v3  ;;  %2426 = vmatpush3.bf16.msra.mxu1 %v2531_v3  ;;  %v2567_v39 = vld [vmem:[%s2939_s5 + $0xf8] sm:$0xff]  }
  0x69   : > { %2343 = vmatprep.subr.bf16.mxu0 %v2532_v6  ;;  %2419 = vmatprep.subr.bf16.mxu1 %v2532_v6 }
  0x6c   : > { %2344 = vmatpush3.bf16.msra.mxu0 %v2532_v6  ;;  %2427 = vmatpush3.bf16.msra.mxu1 %v2532_v6 }
  0x6d   : > { %2345 = vmatprep.subr.bf16.mxu0 %v2533_v7  ;;  %2420 = vmatprep.subr.bf16.mxu1 %v2533_v7 }
  0x70   : > { %2346 = vmatpush3.bf16.msra.mxu0 %v2533_v7  ;;  %2428 = vmatpush3.bf16.msra.mxu1 %v2533_v7 }
  0x71   : > { %2347 = vmatprep.subr.bf16.mxu0 %v2534_v8  ;;  %2421 = vmatprep.subr.bf16.mxu1 %v2534_v8 }
  0x74   : > { %2348 = vmatpush3.bf16.msra.mxu0 %v2534_v8  ;;  %2429 = vmatpush3.bf16.msra.mxu1 %v2534_v8 }
  0x75   : > { %2349 = vmatprep.subr.bf16.mxu0 %v2535_v9  ;;  %2422 = vmatprep.subr.bf16.mxu1 %v2535_v9 }
  0x78   : > { %2350 = vmatpush3.bf16.msra.mxu0 %v2535_v9  ;;  %2430 = vmatpush3.bf16.msra.mxu1 %v2535_v9 }
  0x7b   : > { %2352 = vmatmul.mubr.bf16.vlgmr.msra.gmra.mxu0 %v2538_v10  ;;  %2384 = vmatmul.mubr.bf16.vlgmr.msra.gmra.mxu1 %v2539_v11 }
  0x7c   : > { %2355 = vmatprep.mubr.bf16.mxu0 %v2540_v12  ;;  %2387 = vmatprep.mubr.bf16.mxu1 %v2541_v13 }
  0x83   : > { %2356 = vmatmul.mubr.bf16.gmra.mxu0 %v2542_v14  ;;  %2388 = vmatmul.mubr.bf16.gmra.mxu1 %v2543_v15 }
  0x84   : > { %2359 = vmatprep.mubr.bf16.mxu0 %v2544_v16  ;;  %2391 = vmatprep.mubr.bf16.mxu1 %v2545_v17 }
  0x8b   : > { %2360 = vmatmul.mubr.bf16.gmra.mxu0 %v2546_v18  ;;  %2392 = vmatmul.mubr.bf16.gmra.mxu1 %v2547_v19 }
  0x8c   : > { %2363 = vmatprep.mubr.bf16.mxu0 %v2548_v20  ;;  %2395 = vmatprep.mubr.bf16.mxu1 %v2549_v21 }
  0x93   : > { %2364 = vmatmul.mubr.bf16.gmra.mxu0 %v2550_v22  ;;  %2396 = vmatmul.mubr.bf16.gmra.mxu1 %v2551_v23 }
  0x94   : > { %2367 = vmatprep.mubr.bf16.mxu0 %v2552_v24  ;;  %2399 = vmatprep.mubr.bf16.mxu1 %v2553_v25 }
  0x9b   : > { %2368 = vmatmul.mubr.bf16.gmra.mxu0 %v2554_v26  ;;  %2400 = vmatmul.mubr.bf16.gmra.mxu1 %v2555_v27 }
  0x9c   : > { %2371 = vmatprep.mubr.bf16.mxu0 %v2556_v28  ;;  %2403 = vmatprep.mubr.bf16.mxu1 %v2557_v29 }
  0xa3   : > { %2372 = vmatmul.mubr.bf16.gmra.mxu0 %v2558_v30  ;;  %2404 = vmatmul.mubr.bf16.gmra.mxu1 %v2559_v31 }
  0xa4   : > { %2375 = vmatprep.mubr.bf16.mxu0 %v2560_v32  ;;  %2407 = vmatprep.mubr.bf16.mxu1 %v2561_v33 }
  0xab   : > { %2376 = vmatmul.mubr.bf16.gmra.mxu0 %v2562_v34  ;;  %2408 = vmatmul.mubr.bf16.gmra.mxu1 %v2563_v35 }
  0xac   : > { %2379 = vmatprep.mubr.bf16.mxu0 %v2564_v36  ;;  %2411 = vmatprep.mubr.bf16.mxu1 %v2565_v37 }
  0xb3   : > { %2380 = vmatmul.mubr.bf16.gmra.mxu0 %v2566_v38  ;;  %2412 = vmatmul.mubr.bf16.gmra.mxu1 %v2567_v39 }
 0x13b   : > { %v2353_v41 = vpop.f32.mrf.mxu0  ;;  %v2385_v42 = vpop.f32.mrf.mxu1 }
 0x13c   : > { %v1254_v43 = vmul.f32 %v2353_v41, %v2985_v40  ;;  %v1286_v44 = vmul.f32 %v2385_v42, %v2985_v40 }
 0x13d   : > { %v795_v46 = vpop.f32.mrf.mxu0  ;;  %v923_v47 = vpop.f32.mrf.mxu1 }
 0x13e   : > { %v1252_v48 = vmul.f32 %v2985_v40, %v795_v46  ;;  %v1284_v49 = vmul.f32 %v2985_v40, %v923_v47  ;;  %v1325_v52 = vadd.f32 %v2989_v45, %v1254_v43  ;;  %v1357_v53 = vadd.f32 %v2989_v45, %v1286_v44 }
 0x13f   : > { %v2354_v50 = vpop.f32.mrf.mxu0  ;;  %v2386_v51 = vpop.f32.mrf.mxu1 }
 0x140   : > { %v1255_v54 = vmul.f32 %v2354_v50, %v2985_v40  ;;  %v1287_v55 = vmul.f32 %v2386_v51, %v2985_v40  ;;  %v1323_v58 = vadd.f32 %v2989_v45, %v1252_v48  ;;  %v1355_v59 = vadd.f32 %v2989_v45, %v1284_v49 }
 0x141   : > { %v798_v56 = vpop.f32.mrf.mxu0  ;;  %v926_v57 = vpop.f32.mrf.mxu1  ;;  %v1389_v2 = vmax.f32 %v1325_v52, 0.0  ;;  %v1421_v3 = vmax.f32 %v1357_v53, 0.0 }
 0x142   : > { %v1253_v60 = vmul.f32 %v2985_v40, %v798_v56  ;;  %v1285_v61 = vmul.f32 %v2985_v40, %v926_v57  ;;  %v1326_v62 = vadd.f32 %v2989_v45, %v1255_v54  ;;  %v1358_v63 = vadd.f32 %v2989_v45, %v1287_v55 }
 0x143   : > { %v2357_v0 = vpop.f32.mrf.mxu0  ;;  %v2389_v1 = vpop.f32.mrf.mxu1  ;;  %v1387_v12 = vmax.f32 %v1323_v58, 0.0  ;;  %v1419_v13 = vmax.f32 %v1355_v59, 0.0 }
 0x144   : > { %v1324_v4 = vadd.f32 %v2989_v45, %v1253_v60  ;;  %v1356_v5 = vadd.f32 %v2989_v45, %v1285_v61  ;;  %v1390_v6 = vmax.f32 %v1326_v62, 0.0  ;;  %v1422_v7 = vmax.f32 %v1358_v63, 0.0 }
 0x145   : > { %v1258_v8 = vmul.f32 %v2357_v0, %v2985_v40  ;;  %v1290_v9 = vmul.f32 %v2389_v1, %v2985_v40  ;;  %v811_v10 = vpop.f32.mrf.mxu0  ;;  %v939_v11 = vpop.f32.mrf.mxu1 }
 0x146   : > { %v1388_v14 = vmax.f32 %v1324_v4, 0.0  ;;  %v1420_v15 = vmax.f32 %v1356_v5, 0.0  ;;  %v2112_v16 = vpack.c.bf16 %v1390_v6, %v1389_v2  ;;  %v2192_v17 = vpack.c.bf16 %v1422_v7, %v1421_v3 }
 0x147   : > { %v1256_v18 = vmul.f32 %v2985_v40, %v811_v10  ;;  %v1288_v19 = vmul.f32 %v2985_v40, %v939_v11  ;;  %v2358_v20 = vpop.f32.mrf.mxu0  ;;  %v2390_v21 = vpop.f32.mrf.mxu1  ;;  %v1329_v24 = vadd.f32 %v2989_v45, %v1258_v8  ;;  %v1361_v25 = vadd.f32 %v2989_v45, %v1290_v9 }
 0x148   : > { %v2107_v22 = vpack.c.bf16 %v1388_v14, %v1387_v12  ;;  %v2187_v23 = vpack.c.bf16 %v1420_v15, %v1419_v13  ;;  %2264 = vst [vmem:[%s3011_s23 + $0x8] sm:$0xff] %v2112_v16   ;;  %2280 = vst [vmem:[%s3011_s23 + $0x88] sm:$0xff] %v2192_v17   ;;  %v1259_v26 = vmul.f32 %v2358_v20, %v2985_v40 }
 0x149   : > { %v1291_v27 = vmul.f32 %v2390_v21, %v2985_v40  ;;  %v814_v28 = vpop.f32.mrf.mxu0  ;;  %v942_v29 = vpop.f32.mrf.mxu1  ;;  %v1327_v30 = vadd.f32 %v2989_v45, %v1256_v18  ;;  %v1359_v31 = vadd.f32 %v2989_v45, %v1288_v19  ;;  %v1393_v43 = vmax.f32 %v1329_v24, 0.0 }
 0x14a   : > { %2108 = vst [vmem:[%s3011_s23] sm:$0xff] %v2107_v22   ;;  %2279 = vst [vmem:[%s3011_s23 + $0x80] sm:$0xff] %v2187_v23   ;;  %v1257_v32 = vmul.f32 %v2985_v40, %v814_v28  ;;  %v1289_v33 = vmul.f32 %v2985_v40, %v942_v29  ;;  %v1330_v34 = vadd.f32 %v2989_v45, %v1259_v26  ;;  %v1425_v44 = vmax.f32 %v1361_v25, 0.0 }
 0x14b   : > { %v1362_v35 = vadd.f32 %v2989_v45, %v1291_v27  ;;  %v2361_v36 = vpop.f32.mrf.mxu0  ;;  %v2393_v37 = vpop.f32.mrf.mxu1  ;;  %v1391_v50 = vmax.f32 %v1327_v30, 0.0  ;;  %v1423_v51 = vmax.f32 %v1359_v31, 0.0 }
 0x14c   : > { %v1328_v38 = vadd.f32 %v2989_v45, %v1257_v32  ;;  %v1360_v39 = vadd.f32 %v2989_v45, %v1289_v33  ;;  %v1262_v41 = vmul.f32 %v2361_v36, %v2985_v40  ;;  %v1294_v42 = vmul.f32 %v2393_v37, %v2985_v40 }
 0x14d   : > { %v1394_v46 = vmax.f32 %v1330_v34, 0.0  ;;  %v1426_v47 = vmax.f32 %v1362_v35, 0.0  ;;  %v827_v48 = vpop.f32.mrf.mxu0  ;;  %v955_v49 = vpop.f32.mrf.mxu1 }
 0x14e   : > { %v1392_v52 = vmax.f32 %v1328_v38, 0.0  ;;  %v1424_v53 = vmax.f32 %v1360_v39, 0.0  ;;  %v1260_v56 = vmul.f32 %v2985_v40, %v827_v48  ;;  %v1292_v57 = vmul.f32 %v2985_v40, %v955_v49 }
 0x14f   : > { %v2122_v54 = vpack.c.bf16 %v1394_v46, %v1393_v43  ;;  %v2202_v55 = vpack.c.bf16 %v1426_v47, %v1425_v44  ;;  %v2362_v58 = vpop.f32.mrf.mxu0  ;;  %v2394_v59 = vpop.f32.mrf.mxu1  ;;  %v1333_v62 = vadd.f32 %v2989_v45, %v1262_v41  ;;  %v1365_v63 = vadd.f32 %v2989_v45, %v1294_v42 }
 0x150   : > { %v2117_v60 = vpack.c.bf16 %v1392_v52, %v1391_v50  ;;  %v2197_v61 = vpack.c.bf16 %v1424_v53, %v1423_v51  ;;  %v1263_v0 = vmul.f32 %v2362_v58, %v2985_v40  ;;  %v1295_v1 = vmul.f32 %v2394_v59, %v2985_v40 }
 0x151   : > { %2266 = vst [vmem:[%s3011_s23 + $0x18] sm:$0xff] %v2122_v54   ;;  %2282 = vst [vmem:[%s3011_s23 + $0x98] sm:$0xff] %v2202_v55   ;;  %v830_v2 = vpop.f32.mrf.mxu0  ;;  %v958_v3 = vpop.f32.mrf.mxu1  ;;  %v1331_v4 = vadd.f32 %v2989_v45, %v1260_v56  ;;  %v1363_v5 = vadd.f32 %v2989_v45, %v1292_v57  ;;  %v1397_v12 = vmax.f32 %v1333_v62, 0.0  ;;  %v1429_v13 = vmax.f32 %v1365_v63, 0.0 }
 0x152   : > { %2265 = vst [vmem:[%s3011_s23 + $0x10] sm:$0xff] %v2117_v60   ;;  %2281 = vst [vmem:[%s3011_s23 + $0x90] sm:$0xff] %v2197_v61   ;;  %v1261_v6 = vmul.f32 %v2985_v40, %v830_v2  ;;  %v1293_v7 = vmul.f32 %v2985_v40, %v958_v3  ;;  %v1334_v8 = vadd.f32 %v2989_v45, %v1263_v0 }
 0x153   : > { %v1366_v9 = vadd.f32 %v2989_v45, %v1295_v1  ;;  %v2365_v10 = vpop.f32.mrf.mxu0  ;;  %v2397_v11 = vpop.f32.mrf.mxu1  ;;  %v1395_v22 = vmax.f32 %v1331_v4, 0.0  ;;  %v1427_v23 = vmax.f32 %v1363_v5, 0.0 }
 0x154   : > { %v1332_v14 = vadd.f32 %v2989_v45, %v1261_v6  ;;  %v1364_v15 = vadd.f32 %v2989_v45, %v1293_v7  ;;  %v1398_v16 = vmax.f32 %v1334_v8, 0.0  ;;  %v1266_v18 = vmul.f32 %v2365_v10, %v2985_v40 }
 0x155   : > { %v1430_v17 = vmax.f32 %v1366_v9, 0.0  ;;  %v1298_v19 = vmul.f32 %v2397_v11, %v2985_v40  ;;  %v843_v20 = vpop.f32.mrf.mxu0  ;;  %v971_v21 = vpop.f32.mrf.mxu1 }
 0x156   : > { %v1396_v24 = vmax.f32 %v1332_v14, 0.0  ;;  %v1428_v25 = vmax.f32 %v1364_v15, 0.0  ;;  %v2132_v26 = vpack.c.bf16 %v1398_v16, %v1397_v12  ;;  %v1264_v28 = vmul.f32 %v2985_v40, %v843_v20 }
 0x157   : > { %v2212_v27 = vpack.c.bf16 %v1430_v17, %v1429_v13  ;;  %v1296_v29 = vmul.f32 %v2985_v40, %v971_v21  ;;  %v2366_v30 = vpop.f32.mrf.mxu0  ;;  %v2398_v31 = vpop.f32.mrf.mxu1  ;;  %v1337_v34 = vadd.f32 %v2989_v45, %v1266_v18  ;;  %v1369_v35 = vadd.f32 %v2989_v45, %v1298_v19 }
 0x158   : > { %v2127_v32 = vpack.c.bf16 %v1396_v24, %v1395_v22  ;;  %v2207_v33 = vpack.c.bf16 %v1428_v25, %v1427_v23  ;;  %2268 = vst [vmem:[%s3011_s23 + $0x28] sm:$0xff] %v2132_v26   ;;  %v1267_v36 = vmul.f32 %v2366_v30, %v2985_v40  ;;  %v1299_v37 = vmul.f32 %v2398_v31, %v2985_v40 }
 0x159   : > { %2284 = vst [vmem:[%s3011_s23 + $0xa8] sm:$0xff] %v2212_v27   ;;  %v846_v38 = vpop.f32.mrf.mxu0  ;;  %v974_v39 = vpop.f32.mrf.mxu1  ;;  %v1335_v41 = vadd.f32 %v2989_v45, %v1264_v28  ;;  %v1367_v42 = vadd.f32 %v2989_v45, %v1296_v29  ;;  %v1401_v54 = vmax.f32 %v1337_v34, 0.0  ;;  %v1433_v55 = vmax.f32 %v1369_v35, 0.0 }
 0x15a   : > { %2267 = vst [vmem:[%s3011_s23 + $0x20] sm:$0xff] %v2127_v32   ;;  %2283 = vst [vmem:[%s3011_s23 + $0xa0] sm:$0xff] %v2207_v33   ;;  %v1265_v43 = vmul.f32 %v2985_v40, %v846_v38  ;;  %v1297_v44 = vmul.f32 %v2985_v40, %v974_v39  ;;  %v1338_v46 = vadd.f32 %v2989_v45, %v1267_v36 }
 0x15b   : > { %v1370_v47 = vadd.f32 %v2989_v45, %v1299_v37  ;;  %v2369_v48 = vpop.f32.mrf.mxu0  ;;  %v2401_v49 = vpop.f32.mrf.mxu1  ;;  %v1399_v60 = vmax.f32 %v1335_v41, 0.0  ;;  %v1431_v61 = vmax.f32 %v1367_v42, 0.0 }
 0x15c   : > { %v1336_v50 = vadd.f32 %v2989_v45, %v1265_v43  ;;  %v1368_v51 = vadd.f32 %v2989_v45, %v1297_v44  ;;  %v1270_v52 = vmul.f32 %v2369_v48, %v2985_v40  ;;  %v1302_v53 = vmul.f32 %v2401_v49, %v2985_v40 }
 0x15d   : > { %v1402_v56 = vmax.f32 %v1338_v46, 0.0  ;;  %v1434_v57 = vmax.f32 %v1370_v47, 0.0  ;;  %v859_v58 = vpop.f32.mrf.mxu0  ;;  %v987_v59 = vpop.f32.mrf.mxu1 }
 0x15e   : > { %v1400_v62 = vmax.f32 %v1336_v50, 0.0  ;;  %v1432_v63 = vmax.f32 %v1368_v51, 0.0  ;;  %v1268_v2 = vmul.f32 %v2985_v40, %v859_v58  ;;  %v1300_v3 = vmul.f32 %v2985_v40, %v987_v59 }
 0x15f   : > { %v2142_v0 = vpack.c.bf16 %v1402_v56, %v1401_v54  ;;  %v2222_v1 = vpack.c.bf16 %v1434_v57, %v1433_v55  ;;  %v2370_v4 = vpop.f32.mrf.mxu0  ;;  %v2402_v5 = vpop.f32.mrf.mxu1  ;;  %v1341_v8 = vadd.f32 %v2989_v45, %v1270_v52  ;;  %v1373_v9 = vadd.f32 %v2989_v45, %v1302_v53 }
 0x160   : > { %v2137_v6 = vpack.c.bf16 %v1400_v62, %v1399_v60  ;;  %v2217_v7 = vpack.c.bf16 %v1432_v63, %v1431_v61  ;;  %v1271_v10 = vmul.f32 %v2370_v4, %v2985_v40  ;;  %v1303_v11 = vmul.f32 %v2402_v5, %v2985_v40 }
 0x161   : > { %2270 = vst [vmem:[%s3011_s23 + $0x38] sm:$0xff] %v2142_v0   ;;  %2286 = vst [vmem:[%s3011_s23 + $0xb8] sm:$0xff] %v2222_v1   ;;  %v862_v12 = vpop.f32.mrf.mxu0  ;;  %v990_v13 = vpop.f32.mrf.mxu1  ;;  %v1339_v14 = vadd.f32 %v2989_v45, %v1268_v2  ;;  %v1371_v15 = vadd.f32 %v2989_v45, %v1300_v3  ;;  %v1405_v22 = vmax.f32 %v1341_v8, 0.0  ;;  %v1437_v23 = vmax.f32 %v1373_v9, 0.0 }
 0x162   : > { %2269 = vst [vmem:[%s3011_s23 + $0x30] sm:$0xff] %v2137_v6   ;;  %2285 = vst [vmem:[%s3011_s23 + $0xb0] sm:$0xff] %v2217_v7   ;;  %v1269_v16 = vmul.f32 %v2985_v40, %v862_v12  ;;  %v1301_v17 = vmul.f32 %v2985_v40, %v990_v13  ;;  %v1342_v18 = vadd.f32 %v2989_v45, %v1271_v10 }
 0x163   : > { %v1374_v19 = vadd.f32 %v2989_v45, %v1303_v11  ;;  %v2373_v20 = vpop.f32.mrf.mxu0  ;;  %v2405_v21 = vpop.f32.mrf.mxu1  ;;  %v1403_v32 = vmax.f32 %v1339_v14, 0.0  ;;  %v1435_v33 = vmax.f32 %v1371_v15, 0.0 }
 0x164   : > { %v1340_v24 = vadd.f32 %v2989_v45, %v1269_v16  ;;  %v1372_v25 = vadd.f32 %v2989_v45, %v1301_v17  ;;  %v1406_v26 = vmax.f32 %v1342_v18, 0.0  ;;  %v1274_v28 = vmul.f32 %v2373_v20, %v2985_v40 }
 0x165   : > { %v1438_v27 = vmax.f32 %v1374_v19, 0.0  ;;  %v1306_v29 = vmul.f32 %v2405_v21, %v2985_v40  ;;  %v875_v30 = vpop.f32.mrf.mxu0  ;;  %v1003_v31 = vpop.f32.mrf.mxu1 }
 0x166   : > { %v1404_v34 = vmax.f32 %v1340_v24, 0.0  ;;  %v1436_v35 = vmax.f32 %v1372_v25, 0.0  ;;  %v2152_v36 = vpack.c.bf16 %v1406_v26, %v1405_v22  ;;  %v1272_v38 = vmul.f32 %v2985_v40, %v875_v30 }
 0x167   : > { %v2232_v37 = vpack.c.bf16 %v1438_v27, %v1437_v23  ;;  %v1304_v39 = vmul.f32 %v2985_v40, %v1003_v31  ;;  %v2374_v41 = vpop.f32.mrf.mxu0  ;;  %v2406_v42 = vpop.f32.mrf.mxu1  ;;  %v1345_v46 = vadd.f32 %v2989_v45, %v1274_v28  ;;  %v1377_v47 = vadd.f32 %v2989_v45, %v1306_v29 }
 0x168   : > { %v2147_v43 = vpack.c.bf16 %v1404_v34, %v1403_v32  ;;  %v2227_v44 = vpack.c.bf16 %v1436_v35, %v1435_v33  ;;  %2272 = vst [vmem:[%s3011_s23 + $0x48] sm:$0xff] %v2152_v36   ;;  %v1275_v48 = vmul.f32 %v2374_v41, %v2985_v40  ;;  %v1307_v49 = vmul.f32 %v2406_v42, %v2985_v40 }
 0x169   : > { %2288 = vst [vmem:[%s3011_s23 + $0xc8] sm:$0xff] %v2232_v37   ;;  %v878_v50 = vpop.f32.mrf.mxu0  ;;  %v1006_v51 = vpop.f32.mrf.mxu1  ;;  %v1343_v52 = vadd.f32 %v2989_v45, %v1272_v38  ;;  %v1375_v53 = vadd.f32 %v2989_v45, %v1304_v39  ;;  %v1409_v0 = vmax.f32 %v1345_v46, 0.0  ;;  %v1441_v1 = vmax.f32 %v1377_v47, 0.0 }
 0x16a   : > { %2271 = vst [vmem:[%s3011_s23 + $0x40] sm:$0xff] %v2147_v43   ;;  %2287 = vst [vmem:[%s3011_s23 + $0xc0] sm:$0xff] %v2227_v44   ;;  %v1273_v54 = vmul.f32 %v2985_v40, %v878_v50  ;;  %v1305_v55 = vmul.f32 %v2985_v40, %v1006_v51  ;;  %v1346_v56 = vadd.f32 %v2989_v45, %v1275_v48 }
 0x16b   : > { %v1378_v57 = vadd.f32 %v2989_v45, %v1307_v49  ;;  %v2377_v58 = vpop.f32.mrf.mxu0  ;;  %v2409_v59 = vpop.f32.mrf.mxu1  ;;  %v1407_v6 = vmax.f32 %v1343_v52, 0.0  ;;  %v1439_v7 = vmax.f32 %v1375_v53, 0.0 }
 0x16c   : > { %v1344_v60 = vadd.f32 %v2989_v45, %v1273_v54  ;;  %v1376_v61 = vadd.f32 %v2989_v45, %v1305_v55  ;;  %v1278_v62 = vmul.f32 %v2377_v58, %v2985_v40  ;;  %v1310_v63 = vmul.f32 %v2409_v59, %v2985_v40 }
 0x16d   : > { %v1410_v2 = vmax.f32 %v1346_v56, 0.0  ;;  %v1442_v3 = vmax.f32 %v1378_v57, 0.0  ;;  %v891_v4 = vpop.f32.mrf.mxu0  ;;  %v1019_v5 = vpop.f32.mrf.mxu1 }
 0x16e   : > { %v1408_v8 = vmax.f32 %v1344_v60, 0.0  ;;  %v1440_v9 = vmax.f32 %v1376_v61, 0.0  ;;  %v1276_v12 = vmul.f32 %v2985_v40, %v891_v4  ;;  %v1308_v13 = vmul.f32 %v2985_v40, %v1019_v5 }
 0x16f   : > { %v2162_v10 = vpack.c.bf16 %v1410_v2, %v1409_v0  ;;  %v2242_v11 = vpack.c.bf16 %v1442_v3, %v1441_v1  ;;  %v2378_v14 = vpop.f32.mrf.mxu0  ;;  %v2410_v15 = vpop.f32.mrf.mxu1  ;;  %v1349_v18 = vadd.f32 %v2989_v45, %v1278_v62  ;;  %v1381_v19 = vadd.f32 %v2989_v45, %v1310_v63 }
 0x170   : > { %v2157_v16 = vpack.c.bf16 %v1408_v8, %v1407_v6  ;;  %v2237_v17 = vpack.c.bf16 %v1440_v9, %v1439_v7  ;;  %v1279_v20 = vmul.f32 %v2378_v14, %v2985_v40  ;;  %v1311_v21 = vmul.f32 %v2410_v15, %v2985_v40 }
 0x171   : > { %2274 = vst [vmem:[%s3011_s23 + $0x58] sm:$0xff] %v2162_v10   ;;  %2290 = vst [vmem:[%s3011_s23 + $0xd8] sm:$0xff] %v2242_v11   ;;  %v894_v22 = vpop.f32.mrf.mxu0  ;;  %v1022_v23 = vpop.f32.mrf.mxu1  ;;  %v1347_v24 = vadd.f32 %v2989_v45, %v1276_v12  ;;  %v1379_v25 = vadd.f32 %v2989_v45, %v1308_v13  ;;  %v1413_v32 = vmax.f32 %v1349_v18, 0.0  ;;  %v1445_v33 = vmax.f32 %v1381_v19, 0.0 }
 0x172   : > { %2273 = vst [vmem:[%s3011_s23 + $0x50] sm:$0xff] %v2157_v16   ;;  %2289 = vst [vmem:[%s3011_s23 + $0xd0] sm:$0xff] %v2237_v17   ;;  %v1277_v26 = vmul.f32 %v2985_v40, %v894_v22  ;;  %v1309_v27 = vmul.f32 %v2985_v40, %v1022_v23  ;;  %v1350_v28 = vadd.f32 %v2989_v45, %v1279_v20 }
 0x173   : > { %v1382_v29 = vadd.f32 %v2989_v45, %v1311_v21  ;;  %v2381_v30 = vpop.f32.mrf.mxu0  ;;  %v2413_v31 = vpop.f32.mrf.mxu1  ;;  %v1411_v43 = vmax.f32 %v1347_v24, 0.0  ;;  %v1443_v44 = vmax.f32 %v1379_v25, 0.0 }
 0x174   : > { %v1348_v34 = vadd.f32 %v2989_v45, %v1277_v26  ;;  %v1380_v35 = vadd.f32 %v2989_v45, %v1309_v27  ;;  %v1414_v36 = vmax.f32 %v1350_v28, 0.0  ;;  %v1282_v38 = vmul.f32 %v2381_v30, %v2985_v40 }
 0x175   : > { %v1446_v37 = vmax.f32 %v1382_v29, 0.0  ;;  %v1314_v39 = vmul.f32 %v2413_v31, %v2985_v40  ;;  %v907_v41 = vpop.f32.mrf.mxu0  ;;  %v1035_v42 = vpop.f32.mrf.mxu1 }
 0x176   : > { %v1412_v46 = vmax.f32 %v1348_v34, 0.0  ;;  %v1444_v47 = vmax.f32 %v1380_v35, 0.0  ;;  %v2172_v48 = vpack.c.bf16 %v1414_v36, %v1413_v32  ;;  %v1280_v50 = vmul.f32 %v2985_v40, %v907_v41 }
 0x177   : > { %v2252_v49 = vpack.c.bf16 %v1446_v37, %v1445_v33  ;;  %v1312_v51 = vmul.f32 %v2985_v40, %v1035_v42  ;;  %v2382_v52 = vpop.f32.mrf.mxu0  ;;  %v2414_v53 = vpop.f32.mrf.mxu1  ;;  %v1353_v56 = vadd.f32 %v2989_v45, %v1282_v38  ;;  %v1385_v57 = vadd.f32 %v2989_v45, %v1314_v39 }
 0x178   : > { %v2167_v54 = vpack.c.bf16 %v1412_v46, %v1411_v43  ;;  %v2247_v55 = vpack.c.bf16 %v1444_v47, %v1443_v44  ;;  %2276 = vst [vmem:[%s3011_s23 + $0x68] sm:$0xff] %v2172_v48   ;;  %v1283_v58 = vmul.f32 %v2382_v52, %v2985_v40  ;;  %v1315_v59 = vmul.f32 %v2414_v53, %v2985_v40 }
 0x179   : > { %2292 = vst [vmem:[%s3011_s23 + $0xe8] sm:$0xff] %v2252_v49   ;;  %v910_v60 = vpop.f32.mrf.mxu0  ;;  %v1038_v61 = vpop.f32.mrf.mxu1  ;;  %v1351_v62 = vadd.f32 %v2989_v45, %v1280_v50  ;;  %v1383_v63 = vadd.f32 %v2989_v45, %v1312_v51  ;;  %v1417_v6 = vmax.f32 %v1353_v56, 0.0  ;;  %v1449_v7 = vmax.f32 %v1385_v57, 0.0 }
 0x17a   : > { %2275 = vst [vmem:[%s3011_s23 + $0x60] sm:$0xff] %v2167_v54   ;;  %2291 = vst [vmem:[%s3011_s23 + $0xe0] sm:$0xff] %v2247_v55   ;;  %v1281_v0 = vmul.f32 %v2985_v40, %v910_v60  ;;  %v1313_v1 = vmul.f32 %v2985_v40, %v1038_v61  ;;  %v1354_v2 = vadd.f32 %v2989_v45, %v1283_v58 }
 0x17b   : > { %v1386_v3 = vadd.f32 %v2989_v45, %v1315_v59  ;;  %v1415_v40 = vmax.f32 %v1351_v62, 0.0  ;;  %v1447_v10 = vmax.f32 %v1383_v63, 0.0 }
 0x17c   : > { %v1352_v4 = vadd.f32 %v2989_v45, %v1281_v0  ;;  %v1384_v5 = vadd.f32 %v2989_v45, %v1313_v1  ;;  %v1418_v8 = vmax.f32 %v1354_v2, 0.0 }
 0x17d   : > { %v1450_v9 = vmax.f32 %v1386_v3, 0.0 }
 0x17e   : > { %v1416_v11 = vmax.f32 %v1352_v4, 0.0  ;;  %v1448_v12 = vmax.f32 %v1384_v5, 0.0  ;;  %v2182_v13 = vpack.c.bf16 %v1418_v8, %v1417_v6 }
 0x17f   : > { %v2262_v14 = vpack.c.bf16 %v1450_v9, %v1449_v7 }
 0x180   : > { %v2177_v45 = vpack.c.bf16 %v1416_v11, %v1415_v40  ;;  %v2257_v15 = vpack.c.bf16 %v1448_v12, %v1447_v10  ;;  %2278 = vst [vmem:[%s3011_s23 + $0x78] sm:$0xff] %v2182_v13  }
 0x181   : > { %2294 = vst [vmem:[%s3011_s23 + $0xf8] sm:$0xff] %v2262_v14  }
 0x182   : > { %2277 = vst [vmem:[%s3011_s23 + $0x70] sm:$0xff] %v2177_v45   ;;  %2293 = vst [vmem:[%s3011_s23 + $0xf0] sm:$0xff] %v2257_v15  }
 0x183   : > { %2687 = shalt.err (!%p2684_p0)
}
 0x184   : > { %s2688_s8 = scalar_lea.hbm %s3154_s18, 4096  ;;  %s2692_s29 = scalar_lea.hbm %s3211_s4, 356352 }
 0x185   : > { %p2689_p3 = scmp.ne.s32.totalorder %s3154_s18, %s2688_s8  ;;  %p2693_p6 = scmp.lt.s32.totalorder %s3154_s18, %s3211_s4 }
 0x186   : > { %p2694_p5 = scmp.lt.s32.totalorder %s2692_s29, %s2688_s8 }
 0x187   : > { %p2690_p1 = pnand %p2689_p3, %p2900_p11 }
 0x188   : > { %p2695_p7 = por %p2694_p5, %p2693_p6 }
 0x189   : > { %p2691_p4 = pneg %p2690_p1 }
 0x18b   : > { %p2696_p8 = pnand %p2695_p7, %p2691_p4 }
 0x18d   : > { %2699 = shalt.err (!%p2696_p8)
}
 0x18e   : > { %s2771_s25 = smov 64   ;;  %s2772_s10 = smov 4  }
 0x18f   : > { %2445 = dma.vmem_to_hbm [thread:$0]  (%p2900_p11), %s3156_s27, 4096, %s3154_s18, %s1772_s7, %s2771_s25, %s2771_s25, %s2772_s10  }
 0x190 PF: > { %p2472_p9 = scmp.ge.s32.totalorder %s2762_s20, 2  ;;  %s1801_s24 = sand.u32 1, %s2742_s15  }
 0x191   : > { %p3229_p2 = scmp.ne.s32.totalorder %s3220_s26, 0  ;;  %s1802_s9 = scalar_lea.sflag [#allocation5], %s1801_s24 }
 0x193   : > { %p2462_p10 = pnand %p2472_p9, %p3229_p2 }
 0x195   : > { %p2463_p12 = pneg %p2462_p10 }
 0x197   : > { %2737 = dma.done.wait (%p2463_p12), %s1802_s9, 4096  }
 0x198   : > { %2739 = vsyncadd (%p2463_p12), %s1802_s9, 4294963200  ;;  %s22_s20 = sadd.s32 1, %s2762_s20   ;;  %s3230_s15 = smov %s2746_s16 }
 0x199   : > { %p19_p13 = scmp.ge.s32.totalorder %s22_s20, 89   ;;  %s3231_s16 = smov %s2750_s17 }
 0x19a   : > { %s3232_s17 = smov %s2912_s22  ;;  %s3233_s18 = smov %s2758_s19 }
 0x19b   : > { %s3234_s19 = smov %s3236_s12  ;;  %21 = sbr.rel (!%p19_p13) target bundleno = 8 (0x8), region = 104 }
 0x1a0   :  { %1807 = vsyncpa [#allocation4], 1 }
 0x1a1   :  { %1809 = vsyncpa [#allocation4 + $0x1], 1 }
 0x1a2   :  { %1810 = vsyncpa [#allocation7], 1 }
 0x1a3   :  { %1811 = vsyncpa [#allocation10], 1 }
 0x1a4   :  { %1812 = vsyncpa [#allocation5], 1 }
 0x1a5   :  { %1814 = vsyncpa [#allocation5 + $0x1], 1 }

</bundles_post_ra>
